<compile_context>
chip_gen: v7x
topology: tpu7x:2x2x1
jax: 0.10.0
libtpu: 0.0.40
codegen_flags: <defaults>
</compile_context>

<pallas_src>
import functools
import math

import jax
import jax.numpy as jnp
from jax.experimental import pallas as pl
from jax.experimental.pallas import tpu as pltpu

# ----- small deterministic synthetic "bert-base-cased"-style config -----
VOCAB = 100
HIDDEN = 32
NUM_LAYERS = 2
NUM_HEADS = 2
HEAD_DIM = HIDDEN // NUM_HEADS
INTERMEDIATE = 64
MAX_POS = 16
TYPE_VOCAB = 2
NUM_LABELS = 4                      # len(unique_labels)
NUM_LABELS_PAD = 128                # lane-dense logits slab width
LN_EPS = 1e-12
MASK_MIN = float(jnp.finfo(jnp.float32).min)   # HF uses finfo(dtype).min

# Preferred tile sizes for real BERT shapes (256-multiples feed v6e's 2x256 MXU;
# double-buffered bf16 tiles stay well under v7x's scoped VMEM).  _pick() falls
# back to full-dimension blocks at the toy shapes in __main__.
TM, TN, TK = 256, 512, 256
VMEM_LIMIT = 64 * 1024 * 1024


def _pick(dim, pref):
    """Largest divisor of `dim` that is <= pref and a multiple of 128, else dim."""
    t = min(pref, dim)
    t -= t % 128
    while t >= 128:
        if dim % t == 0:
            return t
        t -= 128
    return dim


# ---------------- Pallas kernels ----------------
def _linear_kernel(x_ref, w_ref, b_ref, o_ref, acc_ref, *, activation):
    # x:(tm,tk) bf16, w:(tk,tn) bf16, b:(1,tn) f32, o:(tm,tn) f32 or bf16
    k = pl.program_id(2)
    part = jnp.dot(x_ref[...], w_ref[...], preferred_element_type=jnp.float32)

    @pl.when(k == 0)
    def _():                         # first K-step: store (no zero-init pass)
        acc_ref[...] = part

    @pl.when(k != 0)
    def _():
        acc_ref[...] += part

    @pl.when(k == pl.num_programs(2) - 1)
    def _():
        y = acc_ref[...] + b_ref[...]
        if activation == "gelu":
            # exact erf-GELU (matches HF BertIntermediate default)
            y = 0.5 * y * (1.0 + jax.lax.erf(y * (1.0 / math.sqrt(2.0))))
        o_ref[...] = y.astype(o_ref.dtype)


def _linear_res_ln_kernel(x_ref, w_ref, b_ref, r_ref, g_ref, bb_ref, o_ref):
    # fused: (x @ w + b + residual) -> LayerNorm.  N (hidden) kept whole so the
    # LN reduction sees the full row.  Accumulates directly into the resident
    # f32 output block (no scratch, no zero-init pass).
    k = pl.program_id(1)
    part = jnp.dot(x_ref[...], w_ref[...], preferred_element_type=jnp.float32)

    @pl.when(k == 0)
    def _():
        o_ref[...] = part

    @pl.when(k != 0)
    def _():
        o_ref[...] += part

    @pl.when(k == pl.num_programs(1) - 1)
    def _():
        y = o_ref[...] + b_ref[...] + r_ref[...]
        mean = jnp.mean(y, axis=-1, keepdims=True)
        var = jnp.mean((y - mean) ** 2, axis=-1, keepdims=True)
        inv = jax.lax.rsqrt(var + LN_EPS)
        o_ref[...] = (y - mean) * inv * g_ref[...] + bb_ref[...]


def _emb_ln_kernel(we_ref, pt_ref, g_ref, b_ref, o_ref):
    # fused embedding sum (word + (pos+type)) + LayerNorm, one batch per step
    x = we_ref[...] + pt_ref[...]
    mean = jnp.mean(x, axis=-1, keepdims=True)
    var = jnp.mean((x - mean) ** 2, axis=-1, keepdims=True)
    inv = jax.lax.rsqrt(var + LN_EPS)
    o_ref[...] = (x - mean) * inv * g_ref[...] + b_ref[...]


def _attention_kernel(mask_ref, qkv_ref, o_ref, *, scale, num_heads, head_dim, tq):
    # One (batch, query-tile) per grid step.
    #   mask_ref: (1, S) f32 additive key mask
    #   qkv_ref : (S, 3H) bf16 fused Q|K|V columns (resident per batch)
    #   o_ref   : (tq, H) bf16 context output
    hidden = num_heads * head_dim
    qi = pl.program_id(1)
    q_start = pl.multiple_of(qi * tq, tq)
    mask = mask_ref[...]                                        # (1, S)
    # fold 1/sqrt(Dh) into q once (exact in bf16 for power-of-two head dims)
    q_all = qkv_ref[pl.ds(q_start, tq), 0:hidden] * scale       # (tq, H) bf16

    # process heads in >=128-lane groups and write each group's context to
    # o_ref as soon as it is produced (bounds live per-head contexts).
    group = max(1, min(num_heads, 128 // head_dim))
    for g0 in range(0, num_heads, group):
        g1 = min(g0 + group, num_heads)
        ctxs = []
        for h in range(g0, g1):
            lo = h * head_dim
            q = q_all[:, lo:lo + head_dim]                       # (tq, Dh) bf16
            kk = qkv_ref[:, hidden + lo:hidden + lo + head_dim]  # (S, Dh) bf16
            vv = qkv_ref[:, 2 * hidden + lo:2 * hidden + lo + head_dim]
            s = jax.lax.dot_general(q, kk, (((1,), (1,)), ((), ())),
                                    preferred_element_type=jnp.float32)
            s = s + mask                                         # broadcast over queries
            m = jnp.max(s, axis=-1, keepdims=True)
            p = jnp.exp(s - m)
            l = jnp.sum(p, axis=-1, keepdims=True)
            ctx = jnp.dot(p.astype(jnp.bfloat16), vv,
                          preferred_element_type=jnp.float32)
            ctxs.append(ctx * pl.reciprocal(l, approx=True))
        blk = jnp.concatenate(ctxs, axis=-1) if len(ctxs) > 1 else ctxs[0]
        o_ref[:, g0 * head_dim:g1 * head_dim] = blk.astype(o_ref.dtype)


def _cls_ce_kernel(x_ref, w_ref, b_ref, labels_ref, loss_ref, logits_ref):
    # fused classifier matmul + masked token-level cross-entropy (ignore -100).
    # Logits are computed into a lane-padded (M, 128) slab; padded columns carry
    # a -inf bias so they vanish from the logsumexp.
    # TODO(synk): tile M with a grid + SMEM partial sums for very large B*S.
    logits = jnp.dot(x_ref[...], w_ref[...],
                     preferred_element_type=jnp.float32) + b_ref[...]
    logits_ref[...] = logits                                   # (M, 128) lane-dense
    labels = labels_ref[...]                                   # (M, 1) int32
    m = jnp.max(logits, axis=-1, keepdims=True)
    shifted = logits - m
    lse = jnp.log(jnp.sum(jnp.exp(shifted), axis=-1, keepdims=True))
    logp = shifted - lse
    col = jax.lax.broadcasted_iota(jnp.int32, logits.shape, 1)
    onehot = (col == labels).astype(jnp.float32)
    picked = jnp.sum(logp * onehot, axis=-1, keepdims=True)    # (M, 1)
    valid = (labels != -100).astype(jnp.float32)               # exact ignore_index
    total = jnp.sum(-picked * valid, keepdims=True)            # (1, 1)
    count = jnp.sum(valid, keepdims=True)                      # (1, 1)
    loss_ref[...] = total / count                              # NaN if all ignored (HF)


# ---------------- wrappers ----------------
def pallas_linear(x, w, b, activation=None, out_dtype=jnp.float32):
    M, K = x.shape
    N = w.shape[1]
    tm, tn, tk = _pick(M, TM), _pick(N, TN), _pick(K, TK)
    kernel = functools.partial(_linear_kernel, activation=activation)
    return pl.pallas_call(
        kernel,
        out_shape=jax.ShapeDtypeStruct((M, N), out_dtype),
        grid=(M // tm, N // tn, K // tk),
        in_specs=[pl.BlockSpec((tm, tk), lambda i, j, k: (i, k)),
                  pl.BlockSpec((tk, tn), lambda i, j, k: (k, j)),
                  pl.BlockSpec((1, tn), lambda i, j, k: (0, j))],
        out_specs=pl.BlockSpec((tm, tn), lambda i, j, k: (i, j)),
        scratch_shapes=[pltpu.VMEM((tm, tn), jnp.float32)],
        compiler_params=pltpu.CompilerParams(
            dimension_semantics=("parallel", "parallel", "arbitrary"),
            vmem_limit_bytes=VMEM_LIMIT),
    )(x, w, b.reshape(1, N))


def pallas_linear_res_ln(x, w, b, residual, gamma, beta):
    M, K = x.shape
    N = w.shape[1]
    tm, tk = _pick(M, TM), _pick(K, TK)
    return pl.pallas_call(
        _linear_res_ln_kernel,
        out_shape=jax.ShapeDtypeStruct((M, N), jnp.float32),
        grid=(M // tm, K // tk),
        in_specs=[pl.BlockSpec((tm, tk), lambda i, k: (i, k)),
                  pl.BlockSpec((tk, N), lambda i, k: (k, 0)),
                  pl.BlockSpec((1, N), lambda i, k: (0, 0)),
                  pl.BlockSpec((tm, N), lambda i, k: (i, 0)),
                  pl.BlockSpec((1, N), lambda i, k: (0, 0)),
                  pl.BlockSpec((1, N), lambda i, k: (0, 0))],
        out_specs=pl.BlockSpec((tm, N), lambda i, k: (i, 0)),
        compiler_params=pltpu.CompilerParams(
            dimension_semantics=("parallel", "arbitrary"),
            vmem_limit_bytes=VMEM_LIMIT),
    )(x, w, b.reshape(1, N), residual, gamma, beta)


def pallas_emb_ln(we, pt, g, b):
    B, S, H = we.shape
    return pl.pallas_call(
        _emb_ln_kernel,
        out_shape=jax.ShapeDtypeStruct((B, S, H), jnp.float32),
        grid=(B,),
        in_specs=[pl.BlockSpec((None, S, H), lambda i: (i, 0, 0)),
                  pl.BlockSpec((S, H), lambda i: (0, 0)),
                  pl.BlockSpec((1, H), lambda i: (0, 0)),
                  pl.BlockSpec((1, H), lambda i: (0, 0))],
        out_specs=pl.BlockSpec((None, S, H), lambda i: (i, 0, 0)),
        compiler_params=pltpu.CompilerParams(
            dimension_semantics=("parallel",)),
    )(we, pt, g, b)


def pallas_attention(qkv, add_mask):
    B, S, H3 = qkv.shape
    H = HIDDEN
    tq = _pick(S, 256)          # query-tile axis; full S at toy shapes
    kernel = functools.partial(_attention_kernel,
                               scale=1.0 / math.sqrt(HEAD_DIM),
                               num_heads=NUM_HEADS, head_dim=HEAD_DIM, tq=tq)
    return pl.pallas_call(
        kernel,
        out_shape=jax.ShapeDtypeStruct((B, S, H), jnp.bfloat16),
        grid=(B, S // tq),
        in_specs=[pl.BlockSpec((None, 1, S), lambda b, qi: (b, 0, 0)),
                  pl.BlockSpec((None, S, H3), lambda b, qi: (b, 0, 0))],
        out_specs=pl.BlockSpec((None, tq, H), lambda b, qi: (b, qi, 0)),
        compiler_params=pltpu.CompilerParams(
            dimension_semantics=("parallel", "parallel")),
    )(add_mask, qkv)


def pallas_classifier_ce(x, w_pad, b_pad, labels_flat):
    M = x.shape[0]
    L = w_pad.shape[1]          # NUM_LABELS_PAD (lane-dense)
    loss, logits_pad = pl.pallas_call(
        _cls_ce_kernel,
        out_shape=(jax.ShapeDtypeStruct((1, 1), jnp.float32),
                   jax.ShapeDtypeStruct((M, L), jnp.float32)),
    )(x, w_pad, b_pad.reshape(1, L),
      labels_flat.reshape(M, 1).astype(jnp.int32))
    return loss[0, 0], logits_pad


# ---------------- deterministic parameter init ----------------
def init_params(key):
    def normal(k, shape):
        return 0.02 * jax.random.normal(k, shape, dtype=jnp.float32)

    keys = jax.random.split(key, 4 + NUM_LAYERS)
    params = {
        "word_emb": normal(keys[0], (VOCAB, HIDDEN)),
        "pos_emb": normal(keys[1], (MAX_POS, HIDDEN)),
        "type_emb": normal(keys[2], (TYPE_VOCAB, HIDDEN)),
        "emb_ln_g": jnp.ones((HIDDEN,), jnp.float32),
        "emb_ln_b": jnp.zeros((HIDDEN,), jnp.float32),
        "cls_w": normal(keys[3], (HIDDEN, NUM_LABELS)),
        "cls_b": jnp.zeros((NUM_LABELS,), jnp.float32),
        "layers": [],
    }
    for li in range(NUM_LAYERS):
        lk = jax.random.split(keys[4 + li], 6)
        params["layers"].append({
            "wq": normal(lk[0], (HIDDEN, HIDDEN)), "bq": jnp.zeros((HIDDEN,), jnp.float32),
            "wk": normal(lk[1], (HIDDEN, HIDDEN)), "bk": jnp.zeros((HIDDEN,), jnp.float32),
            "wv": normal(lk[2], (HIDDEN, HIDDEN)), "bv": jnp.zeros((HIDDEN,), jnp.float32),
            "wo": normal(lk[3], (HIDDEN, HIDDEN)), "bo": jnp.zeros((HIDDEN,), jnp.float32),
            "ln1_g": jnp.ones((HIDDEN,), jnp.float32), "ln1_b": jnp.zeros((HIDDEN,), jnp.float32),
            "wi": normal(lk[4], (HIDDEN, INTERMEDIATE)), "bi": jnp.zeros((INTERMEDIATE,), jnp.float32),
            "wo2": normal(lk[5], (INTERMEDIATE, HIDDEN)), "bo2": jnp.zeros((HIDDEN,), jnp.float32),
            "ln2_g": jnp.ones((HIDDEN,), jnp.float32), "ln2_b": jnp.zeros((HIDDEN,), jnp.float32),
        })
    return params


def prepare_params(params):
    """One-time weight prep: QKV concat, bf16 casts, LN reshape, padded classifier."""
    bf16 = jnp.bfloat16
    cls_w_pad = jnp.zeros((HIDDEN, NUM_LABELS_PAD), bf16)
    cls_w_pad = cls_w_pad.at[:, :NUM_LABELS].set(params["cls_w"].astype(bf16))
    cls_b_pad = jnp.full((NUM_LABELS_PAD,), MASK_MIN, jnp.float32)
    cls_b_pad = cls_b_pad.at[:NUM_LABELS].set(params["cls_b"])
    prep = {
        "word_emb": params["word_emb"],
        # token_type_ids == 0 -> fold type embedding row 0 into the position table
        "pos_type": params["pos_emb"] + params["type_emb"][0][None, :],
        "emb_ln_g": params["emb_ln_g"].reshape(1, HIDDEN),
        "emb_ln_b": params["emb_ln_b"].reshape(1, HIDDEN),
        "cls_w": cls_w_pad,
        "cls_b": cls_b_pad,
        "layers": [],
    }
    for lp in params["layers"]:
        prep["layers"].append({
            "w_qkv": jnp.concatenate([lp["wq"], lp["wk"], lp["wv"]], axis=1).astype(bf16),
            "b_qkv": jnp.concatenate([lp["bq"], lp["bk"], lp["bv"]]),
            "wo": lp["wo"].astype(bf16), "bo": lp["bo"],
            "ln1_g": lp["ln1_g"].reshape(1, HIDDEN), "ln1_b": lp["ln1_b"].reshape(1, HIDDEN),
            "wi": lp["wi"].astype(bf16), "bi": lp["bi"],
            "wo2": lp["wo2"].astype(bf16), "bo2": lp["bo2"],
            "ln2_g": lp["ln2_g"].reshape(1, HIDDEN), "ln2_b": lp["ln2_b"].reshape(1, HIDDEN),
        })
    return prep


# ---------------- full forward: (loss, logits) like return_dict=False ----------------
def bert_token_classification_forward(prep, input_ids, mask, labels):
    B, S = input_ids.shape
    M = B * S
    bf16 = jnp.bfloat16

    # embedding gather is glue; sum + LayerNorm fused in one kernel
    we = jnp.take(prep["word_emb"], input_ids, axis=0)            # (B, S, H)
    pt = prep["pos_type"][:S]                                     # (S, H)
    x = pallas_emb_ln(we, pt, prep["emb_ln_g"], prep["emb_ln_b"]).reshape(M, HIDDEN)
    # dropout is identity (inference semantics)

    add_mask = ((1.0 - mask.astype(jnp.float32)) * MASK_MIN).reshape(B, 1, S)

    for lp in prep["layers"]:
        # fused QKV projection -> bf16 directly (no wrapper-side cast)
        qkv = pallas_linear(x.astype(bf16), lp["w_qkv"], lp["b_qkv"],
                            out_dtype=bf16)                       # (M, 3H) bf16
        # attention consumes fused qkv; bf16 lane-dense context out
        ctx = pallas_attention(qkv.reshape(B, S, 3 * HIDDEN), add_mask)
        # attention output projection fused with bias + residual + LayerNorm
        x = pallas_linear_res_ln(ctx.reshape(M, HIDDEN), lp["wo"], lp["bo"],
                                 x, lp["ln1_g"], lp["ln1_b"])     # (M, H) f32
        # FFN: intermediate linear fused with erf-GELU, bf16 out
        inter = pallas_linear(x.astype(bf16), lp["wi"], lp["bi"],
                              activation="gelu", out_dtype=bf16)  # (M, I) bf16
        # FFN output projection fused with bias + residual + LayerNorm
        x = pallas_linear_res_ln(inter, lp["wo2"], lp["bo2"],
                                 x, lp["ln2_g"], lp["ln2_b"])     # (M, H) f32

    # classifier matmul fused with masked token cross-entropy (ignore_index=-100),
    # lane-padded logits slab -> slice to NUM_LABELS in the wrapper
    loss, logits_pad = pallas_classifier_ce(x.astype(bf16), prep["cls_w"],
                                            prep["cls_b"], labels.reshape(M))
    logits = logits_pad[:, :NUM_LABELS]
    return loss, logits.reshape(B, S, NUM_LABELS)


if __name__ == "__main__":
    key = jax.random.PRNGKey(0)
    pkey, ikey, lkey = jax.random.split(key, 3)
    params = init_params(pkey)
    prep = prepare_params(params)

    B, S = 2, 8
    input_id = jax.random.randint(ikey, (B, S), 0, VOCAB, dtype=jnp.int32)
    mask = jnp.array([[1, 1, 1, 1, 1, 1, 1, 1],
                      [1, 1, 1, 1, 1, 0, 0, 0]], dtype=jnp.int32)
    label = jax.random.randint(lkey, (B, S), 0, NUM_LABELS, dtype=jnp.int32)
    label = jnp.where(mask == 1, label, -100)   # ignore padded tokens (HF ignore_index)

    loss, logits = bert_token_classification_forward(prep, input_id, mask, label)
    jax.block_until_ready((loss, logits))
    assert logits.shape == (B, S, NUM_LABELS)
    assert bool(jnp.isfinite(loss))
    print("KERNEL_OK")
</pallas_src>

<mosaic_0001>
module attributes {stable_mosaic.version = 11 : i64} {
  func.func @_emb_ln_kernel(%arg0: i32, %arg1: memref<1x8x32xf32, #tpu.memory_space<vmem>>, %arg2: memref<8x32xf32, #tpu.memory_space<vmem>>, %arg3: memref<1x32xf32, #tpu.memory_space<vmem>>, %arg4: memref<1x32xf32, #tpu.memory_space<vmem>>, %arg5: memref<1x8x32xf32, #tpu.memory_space<vmem>>) attributes {dimension_semantics = [#tpu.dimension_semantics<parallel>], iteration_bounds = array<i64: 2>, scalar_prefetch = 0 : i64, scratch_operands = 0 : i64, tpu.core_type = #tpu.core_type<tc>, window_params = [{transform_indices = @transform_0, window_bounds = array<i64: 1, 8, 32>}, {pipeline_mode = #tpu.pipeline_mode<synchronous>, transform_indices = @transform_1, window_bounds = array<i64: 8, 32>}, {pipeline_mode = #tpu.pipeline_mode<synchronous>, transform_indices = @transform_2, window_bounds = array<i64: 1, 32>}, {pipeline_mode = #tpu.pipeline_mode<synchronous>, transform_indices = @transform_3, window_bounds = array<i64: 1, 32>}, {transform_indices = @transform_4, window_bounds = array<i64: 1, 8, 32>}]} {
    %c0 = arith.constant 0 : index
    %c0_0 = arith.constant 0 : index
    %c0_1 = arith.constant 0 : index
    %0 = vector.load %arg1[%c0, %c0_0, %c0_1] : memref<1x8x32xf32, #tpu.memory_space<vmem>>, vector<1x8x32xf32>
    %1 = vector.shape_cast %0 : vector<1x8x32xf32> to vector<8x32xf32>
    %c0_2 = arith.constant 0 : index
    %c0_3 = arith.constant 0 : index
    %2 = vector.load %arg2[%c0_2, %c0_3] : memref<8x32xf32, #tpu.memory_space<vmem>>, vector<8x32xf32>
    %3 = arith.addf %1, %2 : vector<8x32xf32>
    %cst = arith.constant dense<0.000000e+00> : vector<8xf32>
    %4 = vector.multi_reduction <add>, %3, %cst [1] : vector<8x32xf32> to vector<8xf32>
    %5 = vector.shape_cast %4 : vector<8xf32> to vector<8x1xf32>
    %cst_4 = arith.constant 3.200000e+01 : f32
    %6 = vector.broadcast %cst_4 : f32 to vector<8x1xf32>
    %7 = arith.divf %5, %6 : vector<8x1xf32>
    %8 = vector.broadcast %7 : vector<8x1xf32> to vector<8x32xf32>
    %9 = arith.subf %3, %8 : vector<8x32xf32>
    %10 = arith.mulf %9, %9 : vector<8x32xf32>
    %cst_5 = arith.constant dense<0.000000e+00> : vector<8xf32>
    %11 = vector.multi_reduction <add>, %10, %cst_5 [1] : vector<8x32xf32> to vector<8xf32>
    %12 = vector.shape_cast %11 : vector<8xf32> to vector<8x1xf32>
    %cst_6 = arith.constant 3.200000e+01 : f32
    %13 = vector.broadcast %cst_6 : f32 to vector<8x1xf32>
    %14 = arith.divf %12, %13 : vector<8x1xf32>
    %cst_7 = arith.constant 9.99999996E-13 : f32
    %15 = vector.broadcast %cst_7 : f32 to vector<8x1xf32>
    %16 = arith.addf %14, %15 : vector<8x1xf32>
    %17 = math.rsqrt %16 : vector<8x1xf32>
    %18 = vector.broadcast %7 : vector<8x1xf32> to vector<8x32xf32>
    %19 = arith.subf %3, %18 : vector<8x32xf32>
    %20 = vector.broadcast %17 : vector<8x1xf32> to vector<8x32xf32>
    %21 = arith.mulf %19, %20 : vector<8x32xf32>
    %c0_8 = arith.constant 0 : index
    %c0_9 = arith.constant 0 : index
    %22 = vector.load %arg3[%c0_8, %c0_9] : memref<1x32xf32, #tpu.memory_space<vmem>>, vector<1x32xf32>
    %23 = vector.broadcast %22 : vector<1x32xf32> to vector<8x32xf32>
    %24 = arith.mulf %21, %23 : vector<8x32xf32>
    %c0_10 = arith.constant 0 : index
    %c0_11 = arith.constant 0 : index
    %25 = vector.load %arg4[%c0_10, %c0_11] : memref<1x32xf32, #tpu.memory_space<vmem>>, vector<1x32xf32>
    %26 = vector.broadcast %25 : vector<1x32xf32> to vector<8x32xf32>
    %27 = arith.addf %24, %26 : vector<8x32xf32>
    %c0_12 = arith.constant 0 : index
    %c0_13 = arith.constant 0 : index
    %c0_14 = arith.constant 0 : index
    %28 = vector.load %arg5[%c0_12, %c0_13, %c0_14] : memref<1x8x32xf32, #tpu.memory_space<vmem>>, vector<1x8x32xf32>
    %29 = vector.shape_cast %28 : vector<1x8x32xf32> to vector<8x32xf32>
    %30 = vector.shape_cast %27 : vector<8x32xf32> to vector<1x8x32xf32>
    tpu.vector_store %arg5[%c0_12, %c0_13, %c0_14], %30 {strides = array<i32>} : memref<1x8x32xf32, #tpu.memory_space<vmem>>, vector<1x8x32xf32>,
    return
  }
  func.func @transform_0(%arg0: i32) -> (i32, i32, i32) {
    %c0_i32 = arith.constant 0 : i32
    %c0_i32_0 = arith.constant 0 : i32
    %c0_i32_1 = arith.constant 0 : i32
    return %arg0, %c0_i32, %c0_i32_0 : i32, i32, i32
  }
  func.func @transform_1(%arg0: i32) -> (i32, i32) {
    %c0_i32 = arith.constant 0 : i32
    %c0_i32_0 = arith.constant 0 : i32
    %c0_i32_1 = arith.constant 0 : i32
    return %c0_i32, %c0_i32_0 : i32, i32
  }
  func.func @transform_2(%arg0: i32) -> (i32, i32) {
    %c0_i32 = arith.constant 0 : i32
    %c0_i32_0 = arith.constant 0 : i32
    %c0_i32_1 = arith.constant 0 : i32
    return %c0_i32, %c0_i32_0 : i32, i32
  }
  func.func @transform_3(%arg0: i32) -> (i32, i32) {
    %c0_i32 = arith.constant 0 : i32
    %c0_i32_0 = arith.constant 0 : i32
    %c0_i32_1 = arith.constant 0 : i32
    return %c0_i32, %c0_i32_0 : i32, i32
  }
  func.func @transform_4(%arg0: i32) -> (i32, i32, i32) {
    %c0_i32 = arith.constant 0 : i32
    %c0_i32_0 = arith.constant 0 : i32
    %c0_i32_1 = arith.constant 0 : i32
    return %arg0, %c0_i32, %c0_i32_0 : i32, i32, i32
  }
}

</mosaic_0001>

<bundles_post_ra>
// kernel: tpu_custom_call.1
= control target key start
LH: loop header
LB: loop body
LE: loop exit
PB: predicated region body
PF: predicated region fallthrough
CT: control target
= control target key end

     0   :  { %9 = vsyncpa [#allocation3], 0  ;;  %s798_s0 = inlined_call_operand.hbm [shape: f32[2,8,32], index: 0, kind: input, shape index: {}]   ;;  %s799_s1 = inlined_call_operand.hbm [shape: f32[8,32], index: 1, kind: input, shape index: {}]   ;;  %s800_s2 = inlined_call_operand.vmem [shape: f32[1,32], index: 2, kind: input, shape index: {}]   ;;  %s801_s3 = inlined_call_operand.vmem [shape: f32[1,32], index: 3, kind: input, shape index: {}]   ;;  %s802_s4 = inlined_call_operand.hbm [shape: f32[2,8,32], index: 4, kind: output, shape index: {}]  }
   0x1   :  { %11 = vsyncpa [#allocation3 + $0x1], 0 }
   0x2   :  { %12 = vsyncpa [#allocation6], 0 }
   0x3   :  { %13 = vsyncpa [#allocation4], 0 }
   0x4   :  { %15 = vsyncpa [#allocation4 + $0x1], 0  ;;  %s588_s15 = smov 0   ;;  %s590_s16 = smov 0  }
   0x5   :  { %s592_s17 = smov 0   ;;  %s594_s18 = smov 0  }
   0x6 LB: > { %s609_s19 = sadd.s32 4294967295, %s558_s18   ;;  %s355_s20 = sadd.s32 4294967294, %s558_s18   ;;  %s558_s18 = sphi %s594_s18, %s826_s18   ;;  %s554_s17 = sphi %s592_s17, %s825_s17   ;;  %s550_s16 = sphi %s590_s16, %s824_s16   ;;  %s546_s15 = sphi %s588_s15, %s823_s15  }
   0x7   : > { %p41_p0 = scmp.ne.s32.totalorder %s550_s16, %s546_s15  ;;  %p803_p1 = scmp.eq.s32.totalorder %s609_s19, 0 }
   0x8   : > { %p134_p3 = scmp.eq.s32.totalorder %s355_s20, 1  ;;  %p356_p5 = scmp.ge.s32.totalorder %s558_s18, 1 }
   0x9   : > { %p618_p4 = por %p803_p1, %p41_p0  ;;  %p141_p7 = scmp.lt.s32.totalorder %s558_s18, 3 }
   0xa   : > { %p623_p6 = por %p134_p3, %p41_p0  ;;  %s560_s24 = smov [#allocation5]  }
   0xb   : > { %s806_s21 = scalar_select %p618_p4, 1, 0 }
   0xc   : > { %s807_s22 = scalar_select %p623_p6, 1, 0 }
   0xd   : > { %p628_p8 = pnand %p356_p5, %p141_p7  ;;  %s154_s25 = sshll.u32 %s560_s24, 4  ;;  %s155_s25 = int_to_ptr.vmem [resolvable:$true] %s154_s25 }
   0xe   : > { %s636_s26 = sadd.s32 1, %s558_s18   ;;  %s28_s30 = sadd.s32 1, %s554_s17 }
   0xf   : > { %s808_s23 = scalar_select %p628_p8, 1, 0 }
  0x10   : > { %p379_p10 = pneg %p628_p8  ;;  %s25_s28 = ssub.s32 %s558_s18, %s636_s26 }
  0x11   : > { %p646_p12 = scmp.eq.s32.totalorder %s25_s28, 0  ;;  %s430_s7 = scalar_lea.hbm %s799_s1, 128 }
  0x12   : > { %p640_p11 = pnand %p379_p10, %p803_p1  ;;  %p431_p0 = scmp.ne.s32.totalorder %s799_s1, %s430_s7 }
  0x13   : > { %s810_s29 = scalar_select %p646_p12, 1, 0 }
  0x14   : > { %p432_p3 = pneg %p640_p11  ;;  %p437_p10 = scmp.lt.u32.totalorder %s430_s7, %s799_s1 }
  0x16   : > { %p433_p5 = pnand %p432_p3, %p431_p0 }
  0x18   : > { %p434_p7 = pneg %p433_p5 }
  0x1a   : > { %p439_p9 = pnand %p437_p10, %p434_p7 }
  0x1c   : > { %442 = shalt.err (!%p439_p9)
}
  0x1d   : > { %s443_s12 = scalar_lea.vmem %s155_s25, 128  ;;  %p451_p6 = scmp.lt.s32.totalorder %s155_s25, %s155_s25 }
  0x1e   : > { %p444_p1 = scmp.ne.s32.totalorder %s155_s25, %s443_s12  ;;  %p452_p4 = scmp.lt.s32.totalorder %s443_s12, %s443_s12 }
  0x20   : > { %p446_p2 = pnand %p444_p1, %p432_p3  ;;  %p453_p8 = por %p452_p4, %p451_p6 }
  0x22   : > { %p447_p13 = pneg %p446_p2 }
  0x24   : > { %p454_p12 = pnand %p453_p8, %p447_p13 }
  0x26   : > { %457 = shalt.err (!%p454_p12)
}
  0x27   : > { %382 = dma.hbm_to_vmem [thread:$0]  (!%p640_p11), %s799_s1, 128, %s155_s25, [#allocation6]  }
  0x28   : > { %p811_p1 = scmp.ne.s32.totalorder %s810_s29, 0  ;;  %p36_p2 = scmp.eq.s32.totalorder %s558_s18, 0 }
  0x29   : > { %p812_p4 = scmp.ne.s32.totalorder %s554_s17, %s550_s16  ;;  %p813_p6 = scmp.eq.s32.totalorder %s609_s19, 1 }
  0x2a   : > { %s672_s20 = scalar_select %p811_p1, %s554_s17, %s28_s30  }
  0x2b   : > { %p680_p8 = por %p813_p6, %p812_p4  ;;  %p392_p9 = scmp.lt.s32.totalorder %s558_s18, 2 }
  0x2c   : > { %s171_s27 = sand.u32 1, %s554_s17   ;;  %p815_p12 = pmov %p812_p4 }
  0x2d   : > { %s359_s28 = sshll.u32 %s171_s27, 3  ;;  %s360_s5 = sshll.u32 %s558_s18, 7 }
  0x2e   : > { %p37_p13 = por %p36_p2, %p815_p12  ;;  %s693_s25 = scalar_lea.hbm %s798_s0, %s360_s5 }
  0x2f   : > { %s175_s29 = scalar_lea.vmem [#allocation2], %s359_s28  ;;  %s172_s9 = scalar_lea.sflag [#allocation3], %s171_s27 }
  0x30   : > { %s182_s30 = sshll.u32 %s175_s29, 4  ;;  %p695_p11 = pnand %p392_p9, %p37_p13  ;;  %s699_s30 = int_to_ptr.vmem [resolvable:$true] %s182_s30 }
  0x31   : > { %s458_s10 = scalar_lea.hbm %s693_s25, 128  ;;  %s463_s13 = scalar_lea.hbm %s798_s0, 256 }
  0x32   : > { %p459_p0 = scmp.ne.s32.totalorder %s693_s25, %s458_s10  ;;  %p460_p3 = pneg %p695_p11 }
  0x33   : > { %p464_p10 = scmp.lt.u32.totalorder %s693_s25, %s798_s0  ;;  %p465_p1 = scmp.lt.u32.totalorder %s463_s13, %s458_s10 }
  0x34   : > { %p461_p5 = pnand %p460_p3, %p459_p0  ;;  %p467_p4 = scmp.lt.u32.totalorder %s458_s10, %s693_s25 }
  0x35   : > { %p466_p2 = por %p465_p1, %p464_p10 }
  0x36   : > { %p462_p7 = pneg %p461_p5 }
  0x37   : > { %p468_p6 = por %p467_p4, %p466_p2 }
  0x39   : > { %p469_p9 = pnand %p468_p6, %p462_p7 }
  0x3b   : > { %472 = shalt.err (!%p469_p9)
}
  0x3c   : > { %s473_s27 = scalar_lea.vmem %s699_s30, 128  ;;  %s561_s5 = smov [#allocation2]  }
  0x3d   : > { %p474_p12 = scmp.ne.s32.totalorder %s699_s30, %s473_s27  ;;  %s478_s6 = sshll.u32 %s561_s5, 4  ;;  %s479_s6 = int_to_ptr.vmem [resolvable:$false] %s478_s6 }
  0x3e   : > { %s480_s7 = scalar_lea.vmem %s479_s6, 256  ;;  %p481_p5 = scmp.lt.s32.totalorder %s699_s30, %s479_s6 }
  0x3f   : > { %p476_p13 = pnand %p474_p12, %p460_p3  ;;  %p482_p10 = scmp.lt.s32.totalorder %s480_s7, %s473_s27 }
  0x41   : > { %p477_p0 = pneg %p476_p13  ;;  %p483_p1 = por %p482_p10, %p481_p5 }
  0x43   : > { %p484_p2 = pnand %p483_p1, %p477_p0 }
  0x45   : > { %487 = shalt.err (!%p484_p2)
}
  0x46   : > { %386 = dma.hbm_to_vmem [thread:$0]  (!%p695_p11), %s693_s25, 128, %s699_s30, %s172_s9  }
  0x47   : > { %p817_p7 = scmp.ne.s32.totalorder %s808_s23, 0 }
  0x48   : > { %s729_s29 = sand.u32 (!%p817_p7), 1, %s550_s16   ;;  %p818_p3 = scmp.ne.s32.totalorder (!%p817_p7), %s806_s21, 0 }
  0x49   : > { %191 = sbr.rel (%p817_p7) target bundleno = 414 (0x19e), region = 36  ;;  %s362_s10 = sshll.u32 (!%p817_p7), %s729_s29, 3 }
  0x4a   : > { %s194_s11 = scalar_lea.sflag (!%p817_p7), [#allocation3], %s729_s29  ;;  %s197_s12 = scalar_lea.vmem (!%p817_p7), [#allocation2], %s362_s10 }
  0x50   : > { %533 = dma.done.wait (%p818_p3), %s194_s11, 128  }
  0x51   : > { %535 = vsyncadd (%p818_p3), %s194_s11, 4294967168  ;;  %p819_p4 = scmp.eq.s32.totalorder %s609_s19, 0 }
  0x53   : > { %537 = dma.done.wait (%p819_p4), [#allocation6], 128   ;;  %p820_p11 = pmov %p819_p4 }
  0x54   : > { %v226_v0 = vld [vmem:[%s197_s12] sm:$0xff]  ;;  %v227_v1 = vld [vmem:[#allocation5] sm:$0xff]  ;;  %vm229_vm0 = vcmask 261120   ;;  %s368_s8 = sshll.u32 %s609_s19, 7  ;;  %s225_s9 = scalar_lea.vmem [#allocation7], %s362_s10 }
  0x55   : > { %539 = vsyncadd (%p820_p11), [#allocation6], 4294967168  ;;  %v228_v2 = vadd.f32 %v227_v1, %v226_v0  ;;  %v365_v13 = vld [vmem:[%s800_s2] ss:$0 sm:$0xff]  ;;  %s275_s13 = sshll.u32 %s225_s9, 4  ;;  %s753_s27 = scalar_lea.hbm %s802_s4, %s368_s8  ;;  %s755_s13 = int_to_ptr.vmem [resolvable:$true] %s275_s13 }
  0x56   : > { %v366_v15 = vld [vmem:[%s801_s3] ss:$0 sm:$0xff]  ;;  %s262_s5 = scalar_lea.sflag [#allocation4], %s729_s29  ;;  %s488_s6 = scalar_lea.vmem %s755_s13, 128 }
  0x57   : > { %v230_v3 = vsel %vm229_vm0, %v228_v2, 0.0  ;;  %p489_p6 = scmp.ne.s32.totalorder %s755_s13, %s488_s6  ;;  %s562_s19 = smov [#allocation7]  }
  0x58   : > { %231 = vadd.xlane.f32.xlu0 %v230_v3  ;;  %s492_s7 = sshll.u32 %s562_s19, 4  ;;  %s493_s7 = int_to_ptr.vmem [resolvable:$false] %s492_s7 }
  0x59   : > { %p490_p9 = pnand %p489_p6, %p680_p8  ;;  %s494_s10 = scalar_lea.vmem %s493_s7, 256 }
  0x5a   : > { %p495_p13 = scmp.lt.s32.totalorder %s755_s13, %s493_s7  ;;  %p496_p0 = scmp.lt.s32.totalorder %s494_s10, %s488_s6 }
  0x5b   : > { %p491_p12 = pneg %p490_p9 }
  0x5c   : > { %p497_p5 = por %p496_p0, %p495_p13 }
  0x5e   : > { %p498_p10 = pnand %p497_p5, %p491_p12 }
  0xe5   : > { %v232_v4 = vpop.xlane.xlu0 %231 }
  0xe6   : > { %v234_v5 = vmul.f32 0.03125, %v232_v4 }
  0xe8   : > { %v235_v6 = vsub.f32 %v228_v2, %v234_v5 }
  0xea   : > { %v236_v7 = vmul.f32 %v235_v6, %v235_v6 }
  0xec   : > { %v237_v8 = vsel %vm229_vm0, %v236_v7, 0.0 }
  0xed   : > { %238 = vadd.xlane.f32.xlu0 %v237_v8 }
 0x17a   : > { %v239_v9 = vpop.xlane.xlu0 %238 }
 0x17b   : > { %v240_v10 = vmul.f32 0.03125, %v239_v9 }
 0x17d   : > { %v241_v11 = vadd.f32 1e-12, %v240_v10 }
 0x17f   : > { %428 = vrsqrt.f32 %v241_v11 }
 0x189   : > { %v429_v12 = vpop.eup %428 }
 0x18a   : > { %v243_v14 = vmul.f32 %v429_v12, %v235_v6 }
 0x18c   : > { %v251_v16 = vmul.f32 %v365_v13, %v243_v14 }
 0x18e   : > { %v259_v17 = vadd.f32 %v366_v15, %v251_v16 }
 0x190   : > { %260 = vst.msk [vmem:[%s225_s9] sm:$0xff] %vm229_vm0, %v259_v17 }
 0x191   : > { %501 = shalt.err (!%p498_p10)
}
 0x192   : > { %s502_s29 = scalar_lea.hbm %s753_s27, 128  ;;  %s506_s21 = scalar_lea.hbm %s802_s4, 256 }
 0x193   : > { %p503_p1 = scmp.ne.s32.totalorder %s753_s27, %s502_s29  ;;  %p507_p3 = scmp.lt.u32.totalorder %s753_s27, %s802_s4 }
 0x194   : > { %p508_p4 = scmp.lt.u32.totalorder %s506_s21, %s502_s29  ;;  %p510_p6 = scmp.lt.u32.totalorder %s502_s29, %s753_s27 }
 0x195   : > { %p504_p2 = pnand %p503_p1, %p680_p8 }
 0x196   : > { %p509_p11 = por %p508_p4, %p507_p3 }
 0x197   : > { %p505_p7 = pneg %p504_p2 }
 0x198   : > { %p511_p9 = por %p510_p6, %p509_p11 }
 0x19a   : > { %p512_p12 = pnand %p511_p9, %p505_p7 }
 0x19c   : > { %515 = shalt.err (!%p512_p12)
}
 0x19d   : > { %377 = dma.vmem_to_hbm [thread:$0]  (%p680_p8), %s755_s13, 128, %s753_s27, %s262_s5  }
 0x19e PF: > { %s287_s30 = sand.u32 1, %s546_s15   ;;  %p821_p13 = scmp.ne.s32.totalorder %s807_s22, 0 }
 0x19f   : > { %p822_p0 = scmp.ge.s32.totalorder %s558_s18, 2  ;;  %s288_s8 = scalar_lea.sflag [#allocation4], %s287_s30 }
 0x1a1   : > { %p388_p5 = pnand %p822_p0, %p821_p13 }
 0x1a3   : > { %541 = dma.done.wait (!%p388_p5), %s288_s8, 128  }
 0x1a4   : > { %543 = vsyncadd (!%p388_p5), %s288_s8, 4294967168  ;;  %p18_p10 = scmp.ge.s32.totalorder %s636_s26, 4   ;;  %s823_s15 = smov %s550_s16 }
 0x1a5   : > { %s824_s16 = smov %s554_s17  ;;  %s825_s17 = smov %s672_s20 }
 0x1a6   : > { %s826_s18 = smov %s636_s26  ;;  %20 = sbr.rel (!%p18_p10) target bundleno = 6 (0x6), region = 85 }
 0x1ad   :  { %293 = vsyncpa [#allocation3], 1 }
 0x1ae   :  { %295 = vsyncpa [#allocation3 + $0x1], 1 }
 0x1af   :  { %296 = vsyncpa [#allocation6], 1 }
 0x1b0   :  { %297 = vsyncpa [#allocation4], 1 }
 0x1b1   :  { %299 = vsyncpa [#allocation4 + $0x1], 1 }

</bundles_post_ra>
